<compile_context>
chip_gen: v7x
topology: tpu7x:2x2x1
jax: 0.10.0
libtpu: 0.0.40
codegen_flags: <defaults>
</compile_context>

<pallas_src>
import functools

import jax
import jax.numpy as jnp
from jax.experimental import pallas as pl
from jax.experimental.pallas import tpu as pltpu


def _round_up(x, m):
    return ((x + m - 1) // m) * m


def _layer_cross_attention_kernel(q_ref, k_ref, v_ref, w1_ref, w2_ref, o_ref):
    tb = q_ref.shape[0]

    # Assemble the 48-lane activation in VMEM: [q | 0-pad(7) | k | v].
    # (The pad lanes are exact zeros, matching the zero rows of the packed W1.)
    zeros = jnp.zeros((tb, 7), jnp.float32)
    x = jnp.concatenate([q_ref[...], zeros, k_ref[...], v_ref[...]], axis=-1)  # (tb, 48) f32

    # Fused MLPs: (tb,48)@(48,24) + ReLU + (tb,24)@(24,48), bf16 MXU operands,
    # f32 accumulation.
    h = jnp.dot(x.astype(jnp.bfloat16), w1_ref[...],
                preferred_element_type=jnp.float32)                 # (tb, 24) f32
    h = jnp.maximum(h, 0.0)
    y = jnp.dot(h.astype(jnp.bfloat16), w2_ref[...],
                preferred_element_type=jnp.float32)                 # (tb, 48) f32

    qf = y[:, 0:16]
    kf = y[:, 16:32]
    vf = y[:, 32:48]

    # softmax(q*k, dim=-1) * v, all in f32 (exact divide: EUP/VPU have slack).
    s = qf * kf
    s_max = jnp.max(s, axis=-1, keepdims=True)
    e = jnp.exp(s - s_max)
    denom = jnp.sum(e, axis=-1, keepdims=True)
    p = e / denom
    o_ref[...] = (p * vf).astype(o_ref.dtype)


def pack_weights(params):
    """Build fused block-diagonal bf16 weights ONCE from PyTorch-layout (out, in) params."""
    w1 = jnp.zeros((48, 24), jnp.float32)
    w1 = w1.at[0:9, 0:8].set(params["wq1"].T)        # q occupies rows 0:9; rows 9:16 stay 0
    w1 = w1.at[16:32, 8:16].set(params["wk1"].T)
    w1 = w1.at[32:48, 16:24].set(params["wv1"].T)

    w2 = jnp.zeros((24, 48), jnp.float32)
    w2 = w2.at[0:8, 0:16].set(params["wq2"].T)
    w2 = w2.at[8:16, 16:32].set(params["wk2"].T)
    w2 = w2.at[16:24, 32:48].set(params["wv2"].T)
    # bf16 for single-pass MXU; the zero blocks stay exactly zero in bf16.
    return w1.astype(jnp.bfloat16), w2.astype(jnp.bfloat16)


@functools.partial(jax.jit, static_argnames=("tile_b",))
def layer_cross_attention(q, k, v, w1, w2, *, tile_b=4096):
    """q:(B,9), k:(B,16,1,1), v:(B,16,1,1), packed bf16 weights w1:(48,24), w2:(24,48) -> (B,16)."""
    B = q.shape[0]

    # Free row-major re-views; no HBM copies (no pad / no concat in the wrapper).
    q2 = q.reshape(B, 9).astype(jnp.float32)
    k2 = k.reshape(B, 16).astype(jnp.float32)
    v2 = v.reshape(B, 16).astype(jnp.float32)

    # Batch tile: multiple of 8 sublanes; cap at ~B/2 so the grid has >=2 steps
    # (lets dimension_semantics=("parallel",) land work on both v7x TensorCores).
    tb = min(_round_up(tile_b, 8), _round_up(B, 8))
    if B > 8:
        tb = min(tb, max(8, _round_up(pl.cdiv(B, 2), 8)))
    if tb > B:
        tb = B  # tiny batch: single full-array block (block dim == array dim is allowed)
    grid = (pl.cdiv(B, tb),)
    # Ragged last block: rows are independent; OOB input rows hold unspecified
    # data but the corresponding output rows are masked on writeback.

    flops = 2 * B * (48 * 24 + 24 * 48)
    bytes_accessed = B * (9 * 4 + 16 * 4 + 16 * 4 + 16 * 4) + (48 * 24 + 24 * 48) * 2
    transcendentals = 16 * B

    out = pl.pallas_call(
        _layer_cross_attention_kernel,
        out_shape=jax.ShapeDtypeStruct((B, 16), jnp.float32),
        grid=grid,
        in_specs=[
            pl.BlockSpec((tb, 9), lambda i: (i, 0)),     # q, batch-tiled
            pl.BlockSpec((tb, 16), lambda i: (i, 0)),    # k, batch-tiled
            pl.BlockSpec((tb, 16), lambda i: (i, 0)),    # v, batch-tiled
            pl.BlockSpec((48, 24), lambda i: (0, 0)),    # fused W1, resident
            pl.BlockSpec((24, 48), lambda i: (0, 0)),    # fused W2, resident
        ],
        out_specs=pl.BlockSpec((tb, 16), lambda i: (i, 0)),
        compiler_params=pltpu.CompilerParams(
            dimension_semantics=("parallel",),           # v7x: shard batch across 2 TCs
            vmem_limit_bytes=48 * 1024 * 1024,           # room for large batch tiles
        ),
        cost_estimate=pl.CostEstimate(
            flops=flops, bytes_accessed=bytes_accessed, transcendentals=transcendentals),
    )(q2, k2, v2, w1, w2)
    return out


def _reference(q, k, v, params):
    """Pure-JAX f32 reference mirroring the PyTorch forward."""
    def mlp(x, w1, w2):
        return jnp.maximum(x @ w1.T, 0.0) @ w2.T
    qf = mlp(q, params["wq1"], params["wq2"])
    kf = mlp(k.reshape(k.shape[0], 16), params["wk1"], params["wk2"])
    vf = mlp(v.reshape(v.shape[0], 16), params["wv1"], params["wv2"])
    return jax.nn.softmax(qf * kf, axis=-1) * vf


def init_params(key):
    """Deterministic weight init (uniform, Kaiming-ish scale). Shapes are (out, in) like PyTorch."""
    ks = jax.random.split(key, 6)

    def u(k, out, inp):
        bound = 1.0 / jnp.sqrt(inp)
        return jax.random.uniform(k, (out, inp), jnp.float32, -bound, bound)

    return {
        "wq1": u(ks[0], 8, 9),  "wq2": u(ks[1], 16, 8),
        "wk1": u(ks[2], 8, 16), "wk2": u(ks[3], 16, 8),
        "wv1": u(ks[4], 8, 16), "wv2": u(ks[5], 16, 8),
    }


if __name__ == "__main__":
    key = jax.random.PRNGKey(0)
    kp, kq, kk, kv = jax.random.split(key, 4)

    params = init_params(kp)
    w1, w2 = pack_weights(params)   # one-time weight packing (bf16)

    # Small primary test (B=8).
    B = 8
    q = jax.random.normal(kq, (B, 9), jnp.float32)
    k = jax.random.normal(kk, (B, 16, 1, 1), jnp.float32)
    v = jax.random.normal(kv, (B, 16, 1, 1), jnp.float32)

    out = jax.block_until_ready(layer_cross_attention(q, k, v, w1, w2))
    ref = _reference(q, k, v, params)
    assert out.shape == (B, 16)
    # Tolerance accounts for bf16 MXU operands (f32 accumulation); errors are O(1e-3).
    assert jnp.allclose(out, ref, atol=2e-2, rtol=2e-2), "mismatch vs reference (B=8)"

    # Second test: non-multiple-of-tile batch to exercise the ragged-grid path.
    B2 = 300
    kq2, kk2, kv2 = jax.random.split(jax.random.PRNGKey(1), 3)
    q2 = jax.random.normal(kq2, (B2, 9), jnp.float32)
    k2 = jax.random.normal(kk2, (B2, 16, 1, 1), jnp.float32)
    v2 = jax.random.normal(kv2, (B2, 16, 1, 1), jnp.float32)

    out2 = jax.block_until_ready(
        layer_cross_attention(q2, k2, v2, w1, w2, tile_b=128))   # grid=(3,), ragged last block
    ref2 = _reference(q2, k2, v2, params)
    assert out2.shape == (B2, 16)
    assert jnp.allclose(out2, ref2, atol=2e-2, rtol=2e-2), "mismatch vs reference (B=300)"

    print("KERNEL_OK")
</pallas_src>

<mosaic_0001>
module attributes {stable_mosaic.version = 11 : i64} {
  func.func @_layer_cross_attention_kernel(%arg0: i32, %arg1: memref<8x9xf32, #tpu.memory_space<vmem>>, %arg2: memref<8x16xf32, #tpu.memory_space<vmem>>, %arg3: memref<8x16xf32, #tpu.memory_space<vmem>>, %arg4: memref<48x24xbf16, #tpu.memory_space<vmem>>, %arg5: memref<24x48xbf16, #tpu.memory_space<vmem>>, %arg6: memref<8x16xf32, #tpu.memory_space<vmem>>) attributes {dimension_semantics = [#tpu.dimension_semantics<parallel>], iteration_bounds = array<i64: 1>, scalar_prefetch = 0 : i64, scratch_operands = 0 : i64, tpu.core_type = #tpu.core_type<tc>, window_params = [{transform_indices = @transform_0, window_bounds = array<i64: 8, 9>}, {transform_indices = @transform_1, window_bounds = array<i64: 8, 16>}, {transform_indices = @transform_2, window_bounds = array<i64: 8, 16>}, {pipeline_mode = #tpu.pipeline_mode<synchronous>, transform_indices = @transform_3, window_bounds = array<i64: 48, 24>}, {pipeline_mode = #tpu.pipeline_mode<synchronous>, transform_indices = @transform_4, window_bounds = array<i64: 24, 48>}, {transform_indices = @transform_5, window_bounds = array<i64: 8, 16>}]} {
    %cst = arith.constant 0.000000e+00 : f32
    %0 = vector.broadcast %cst : f32 to vector<8x7xf32>
    %c0 = arith.constant 0 : index
    %c0_0 = arith.constant 0 : index
    %1 = vector.load %arg1[%c0, %c0_0] : memref<8x9xf32, #tpu.memory_space<vmem>>, vector<8x9xf32>
    %c0_1 = arith.constant 0 : index
    %c0_2 = arith.constant 0 : index
    %2 = vector.load %arg2[%c0_1, %c0_2] : memref<8x16xf32, #tpu.memory_space<vmem>>, vector<8x16xf32>
    %c0_3 = arith.constant 0 : index
    %c0_4 = arith.constant 0 : index
    %3 = vector.load %arg3[%c0_3, %c0_4] : memref<8x16xf32, #tpu.memory_space<vmem>>, vector<8x16xf32>
    %4 = tpu.concatenate %1, %0, %2, %3 in 1 : vector<8x9xf32>, vector<8x7xf32>, vector<8x16xf32>, vector<8x16xf32> -> vector<8x48xf32>
    %5 = arith.truncf %4 : vector<8x48xf32> to vector<8x48xbf16>
    %c0_5 = arith.constant 0 : index
    %c0_6 = arith.constant 0 : index
    %6 = vector.load %arg4[%c0_5, %c0_6] : memref<48x24xbf16, #tpu.memory_space<vmem>>, vector<48x24xbf16>
    %cst_7 = arith.constant dense<0.000000e+00> : vector<8x24xf32>
    %7 = tpu.matmul %5, %6, %cst_7 {dimension_numbers = #tpu.dot_dimension_numbers<[1], [0], [0], [1], [0, 0, 1, 1], [], []>} : vector<8x48xbf16>, vector<48x24xbf16>, vector<8x24xf32> -> vector<8x24xf32>
    %cst_8 = arith.constant 0.000000e+00 : f32
    %8 = vector.broadcast %cst_8 : f32 to vector<8x24xf32>
    %9 = arith.maximumf %7, %8 : vector<8x24xf32>
    %10 = arith.truncf %9 : vector<8x24xf32> to vector<8x24xbf16>
    %c0_9 = arith.constant 0 : index
    %c0_10 = arith.constant 0 : index
    %11 = vector.load %arg5[%c0_9, %c0_10] : memref<24x48xbf16, #tpu.memory_space<vmem>>, vector<24x48xbf16>
    %cst_11 = arith.constant dense<0.000000e+00> : vector<8x48xf32>
    %12 = tpu.matmul %10, %11, %cst_11 {dimension_numbers = #tpu.dot_dimension_numbers<[1], [0], [0], [1], [0, 0, 1, 1], [], []>} : vector<8x24xbf16>, vector<24x48xbf16>, vector<8x48xf32> -> vector<8x48xf32>
    %13 = vector.extract_strided_slice %12 {offsets = [0, 0], sizes = [8, 16], strides = [1, 1]} : vector<8x48xf32> to vector<8x16xf32>
    %14 = vector.extract_strided_slice %12 {offsets = [0, 16], sizes = [8, 16], strides = [1, 1]} : vector<8x48xf32> to vector<8x16xf32>
    %15 = vector.extract_strided_slice %12 {offsets = [0, 32], sizes = [8, 16], strides = [1, 1]} : vector<8x48xf32> to vector<8x16xf32>
    %16 = arith.mulf %13, %14 : vector<8x16xf32>
    %cst_12 = arith.constant dense<0xFF800000> : vector<8xf32>
    %17 = vector.multi_reduction <maximumf>, %16, %cst_12 [1] : vector<8x16xf32> to vector<8xf32>
    %18 = vector.shape_cast %17 : vector<8xf32> to vector<8x1xf32>
    %19 = vector.broadcast %18 : vector<8x1xf32> to vector<8x16xf32>
    %20 = arith.subf %16, %19 : vector<8x16xf32>
    %21 = math.exp %20 : vector<8x16xf32>
    %cst_13 = arith.constant dense<0.000000e+00> : vector<8xf32>
    %22 = vector.multi_reduction <add>, %21, %cst_13 [1] : vector<8x16xf32> to vector<8xf32>
    %23 = vector.shape_cast %22 : vector<8xf32> to vector<8x1xf32>
    %24 = vector.broadcast %23 : vector<8x1xf32> to vector<8x16xf32>
    %25 = arith.divf %21, %24 : vector<8x16xf32>
    %26 = arith.mulf %25, %15 : vector<8x16xf32>
    %c0_14 = arith.constant 0 : index
    %c0_15 = arith.constant 0 : index
    %27 = vector.load %arg6[%c0_14, %c0_15] : memref<8x16xf32, #tpu.memory_space<vmem>>, vector<8x16xf32>
    tpu.vector_store %arg6[%c0_14, %c0_15], %26 {strides = array<i32>} : memref<8x16xf32, #tpu.memory_space<vmem>>, vector<8x16xf32>,
    return
  }
  func.func @transform_0(%arg0: i32) -> (i32, i32) {
    %c0_i32 = arith.constant 0 : i32
    %c0_i32_0 = arith.constant 0 : i32
    return %arg0, %c0_i32 : i32, i32
  }
  func.func @transform_1(%arg0: i32) -> (i32, i32) {
    %c0_i32 = arith.constant 0 : i32
    %c0_i32_0 = arith.constant 0 : i32
    return %arg0, %c0_i32 : i32, i32
  }
  func.func @transform_2(%arg0: i32) -> (i32, i32) {
    %c0_i32 = arith.constant 0 : i32
    %c0_i32_0 = arith.constant 0 : i32
    return %arg0, %c0_i32 : i32, i32
  }
  func.func @transform_3(%arg0: i32) -> (i32, i32) {
    %c0_i32 = arith.constant 0 : i32
    %c0_i32_0 = arith.constant 0 : i32
    %c0_i32_1 = arith.constant 0 : i32
    return %c0_i32, %c0_i32_0 : i32, i32
  }
  func.func @transform_4(%arg0: i32) -> (i32, i32) {
    %c0_i32 = arith.constant 0 : i32
    %c0_i32_0 = arith.constant 0 : i32
    %c0_i32_1 = arith.constant 0 : i32
    return %c0_i32, %c0_i32_0 : i32, i32
  }
  func.func @transform_5(%arg0: i32) -> (i32, i32) {
    %c0_i32 = arith.constant 0 : i32
    %c0_i32_0 = arith.constant 0 : i32
    return %arg0, %c0_i32 : i32, i32
  }
}

</mosaic_0001>

<bundles_post_ra>
// kernel: layer_cross_attention.1
= control target key start
LH: loop header
LB: loop body
LE: loop exit
PB: predicated region body
PF: predicated region fallthrough
CT: control target
= control target key end

     0   :  { %s277_s22 = smov 16   ;;  %v278_v2 = vmov 0.0   ;;  %s279_s28 = smov 32   ;;  %vm280_vm0 = vmmov 0   ;;  %s354_s0 = inlined_call_operand.vmem [shape: f32[8,9], index: 0, kind: input, shape index: {}]   ;;  %s355_s1 = inlined_call_operand.vmem [shape: f32[8,16], index: 1, kind: input, shape index: {}]   ;;  %s356_s2 = inlined_call_operand.vmem [shape: f32[8,16], index: 2, kind: input, shape index: {}]   ;;  %s357_s3 = inlined_call_operand.vmem [shape: bf16[48,24], index: 3, kind: input, shape index: {}]   ;;  %s358_s4 = inlined_call_operand.vmem [shape: bf16[24,48], index: 4, kind: input, shape index: {}]   ;;  %s359_s5 = inlined_call_operand.hbm [shape: f32[8,16], index: 5, kind: output, shape index: {}]  }
   0x1   :  { %v23_v0 = vld [vmem:[%s355_s1] sm:$0xff]  ;;  %219 = vmatprep.subr.bf16.mxu0 %v278_v2  ;;  %229 = vmatprep.subr.bf16.mxu1 %v278_v2  ;;  %v245_v4 = vld [vmem:[%s357_s3 + $0x8] sm:$0xff]  }
   0x2   :  { %v244_v1 = vld [vmem:[%s357_s3] sm:$0xff]   ;;  %26 = vrot.lane.b32.xlu0 %v23_v0, %s277_s22  ;;  %225 = vmatprep.mubr.msk.bf16.mxu0 %vm280_vm0, %v278_v2 }
   0x3   :  { %v24_v3 = vld [vmem:[%s356_s2] sm:$0xff]  ;;  %220 = vmatpush3.bf16.msra.mxu0 %v244_v1 }
   0x4   :  { %221 = vmatprep.subr.bf16.mxu0 %v278_v2  ;;  %v247_v5 = vld [vmem:[%s358_s4] sm:$0xff]  }
   0x6   :  { %30 = vrot.lane.b32.xlu0 %v24_v3, %s279_s28 }
   0x7   :  { %10 = vsyncpa [#allocation3], 0  ;;  %222 = vmatpush3.bf16.msra.mxu0 %v245_v4  ;;  %v246_v6 = vld [vmem:[%s357_s3 + $0x10] sm:$0xff]   ;;  %230 = vmatpush3.bf16.msra.mxu1 %v247_v5  ;;  %vm33_vm1 = vcmask 72704   ;;  %v22_v7 = vld [vmem:[%s354_s0] sm:$0xff]  ;;  %vm35_vm2 = vcmask 130048  }
   0x8   :  { %223 = vmatprep.subr.bf16.mxu0 %v278_v2  ;;  %231 = vmatprep.subr.bf16.mxu1 %v278_v2  ;;  %v34_v9 = vsel %vm33_vm1, %v22_v7, 0.0  ;;  %vm37_vm3 = vcmask 261120   ;;  %vm64_vm4 = vcmask 392192   ;;  %v248_v14 = vld [vmem:[%s358_s4 + $0x8] ss:$0 sps:$4 sm:$0xff]   ;;  %vm126_vm5 = vcmask 1043456  }
   0x9   :  { %233 = vmatprep.mubr.msk.bf16.mxu1 %vm280_vm0, %v278_v2  ;;  %v128_v15 = vsel %vm126_vm5, %v248_v14, 0  ;;  %vm122_vm6 = vcmask 195584   ;;  %s281_s0 = smov 112   ;;  %s282_s4 = smov 96  }
   0xa   :  { %s283_s8 = smov [#allocation2]  }
   0xb   :  { %224 = vmatpush3.bf16.msra.mxu0 %v246_v6  ;;  %232 = vmatpush3.bf16.msra.mxu1 %v128_v15  ;;  %s197_s9 = sshll.u32 %s283_s8, 4  ;;  %s198_s9 = int_to_ptr.vmem [resolvable:$true] %s197_s9 }
   0xc   :  { %s253_s10 = scalar_lea.vmem %s198_s9, 128  ;;  %p258_p1 = scmp.lt.s32.totalorder %s198_s9, %s198_s9 }
   0xd   :  { %p254_p0 = scmp.ne.s32.totalorder %s198_s9, %s253_s10  ;;  %p259_p2 = scmp.lt.s32.totalorder %s253_s10, %s253_s10 }
   0xf   :  { %p260_p3 = por %p259_p2, %p258_p1 }
  0x11   :  { %p261_p4 = pnand %p260_p3, %p254_p0 }
  0x74   :  { %v27_v8 = vpop.permute.xlu0 %26 }
  0x75   :  { %v36_v10 = vsel %vm35_vm2, %v34_v9, %v27_v8 }
  0x78   :  { %v31_v11 = vpop.permute.xlu0 %30 }
  0x79   :  { %v38_v12 = vsel %vm37_vm3, %v36_v10, %v31_v11 }
  0x7a   :  { %v39_v13 = vpack.c.bf16 %v38_v12, %v38_v12 }
  0x7c   :  { %226 = vmatmul.mubr.msk.bf16.vlgmr.msra.gmra.mrb[0].mxu0 %vm64_vm4, %v39_v13 }
 0x14f   :  { %v102_v16 = vpop.f32.mrb[0].mxu0 }
 0x150   :  { %v108_v17 = vmax.f32 %v102_v16, 0.0  ;;  %v227_v18 = vpop.f32.mrb[1].mxu0 }
 0x151   :  { %v105_v19 = vpop.f32.mrb[2].mxu0 }
 0x152   :  { %v109_v20 = vpack.c.bf16 %v108_v17, %v108_v17  ;;  %v228_v21 = vpop.f32.mrb[3].mxu0 }
 0x154   :  { %234 = vmatmul.mubr.msk.bf16.vlgmr.msra.gmra.mrb[0].mxu1 %vm122_vm6, %v109_v20 }
 0x227   :  { %v164_v22 = vpop.f32.mrb[0].mxu1 }
 0x228   :  { %171 = vrot.lane.b32.xlu1 %v164_v22, %s281_s0  ;;  %v235_v23 = vpop.f32.mrb[1].mxu1 }
 0x229   :  { %v167_v24 = vpop.f32.mrb[2].mxu1 }
 0x22a   :  { %v236_v25 = vpop.f32.mrb[3].mxu1 }
 0x29a   :  { %v172_v26 = vpop.permute.xlu1 %171 }
 0x29b   :  { %v174_v27 = vmul.f32 %v172_v26, %v164_v22 }
 0x29d   :  { %v175_v28 = vsel %vm35_vm2, %v174_v27, -inf }
 0x29e   :  { %176 = vmax.xlane.f32.xlu1 %v175_v28 }
 0x32b   :  { %v177_v29 = vpop.xlane.xlu1 %176 }
 0x32c   :  { %v178_v30 = vsub.f32 %v174_v27, %v177_v29 }
 0x32e   :  { %v179_v31 = vmul.f32 1.442695, %v178_v30 }
 0x330   :  { %249 = vpow2.f32 %v179_v31 }
 0x33a   :  { %v250_v32 = vpop.eup %249 }
 0x33b   :  { %v181_v33 = vsel %vm35_vm2, %v250_v32, 0.0 }
 0x33c   :  { %182 = vadd.xlane.f32.xlu0 %v181_v33 }
 0x352   :  { %186 = vrot.lane.b32.xlu0 %v164_v22, %s282_s4 }
 0x3c9   :  { %v183_v34 = vpop.xlane.xlu0 %182 }
 0x3ca   :  { %251 = vrcp.f32 %v183_v34 }
 0x3cd   :  { %v187_v37 = vpop.permute.xlu0 %186 }
 0x3d4   :  { %v252_v35 = vpop.eup %251 }
 0x3d5   :  { %v185_v36 = vmul.f32 %v252_v35, %v250_v32 }
 0x3d7   :  { %v189_v38 = vmul.f32 %v187_v37, %v185_v36 }
 0x3d9   :  { %190 = vst.msk [vmem:[#allocation2] sm:$0xff] %vm35_vm2, %v189_v38 }
 0x3da   :  { %264 = shalt.err (!%p261_p4)
}
 0x3db   :  { %s265_s13 = scalar_lea.hbm %s359_s5, 128 }
 0x3dc   :  { %p266_p5 = scmp.ne.s32.totalorder %s359_s5, %s265_s13  ;;  %p269_p6 = scmp.lt.u32.totalorder %s265_s13, %s359_s5 }
 0x3de   :  { %p271_p7 = pnand %p269_p6, %p266_p5 }
 0x3e0   :  { %274 = shalt.err (!%p271_p7)
}
 0x3e1   :  { %200 = dma.vmem_to_hbm [thread:$0]  %s198_s9, 128, %s359_s5, [#allocation3]  }
 0x3e2   :  { %275 = dma.done.wait [#allocation3], 128  }
 0x3e3   :  { %276 = vsyncadd [#allocation3], 4294967168 }
 0x3e4   :  { %204 = vsyncpa [#allocation3], 1 }

</bundles_post_ra>
